<compile_context>
chip_gen: v5e
topology: v5e:2x2
jax: 0.10.0
libtpu: 0.0.40
codegen_flags: <defaults>
</compile_context>

<pallas_src>
import jax
import jax.numpy as jnp
from jax.experimental import pallas as pl
from jax.experimental.pallas import tpu as pltpu


def _tanhshrink_kernel(x_ref, o_ref):
    x = x_ref[...]
    # Forward semantics of MyTanhshrinkFunction: input - tanh(input)
    o_ref[...] = x - jnp.tanh(x)


def tanhshrink(
    x: jax.Array,
    *,
    tile_rows: int = 1024,      # 1024 rows x 512 lanes x 4 B = 2 MiB f32 blocks
    max_lane: int = 512,        # widest lane-dense layout to try (multiple of 128)
    donate_input: bool = False, # set True only if caller no longer needs `x`
) -> jax.Array:
    """Elementwise Tanhshrink via Pallas. Works for any shape/float dtype."""
    orig_shape = x.shape
    dtype = x.dtype
    n = x.size
    if n == 0:
        return x

    itemsize = jnp.dtype(dtype).itemsize
    x_flat = x.reshape(-1)

    # Only pay the pad + slice HBM passes when numel isn't 128-divisible.
    padded = False
    if n % 128 != 0:
        n_work = pl.cdiv(n, 128) * 128
        x_flat = jnp.concatenate([x_flat, jnp.zeros((n_work - n,), dtype=dtype)])
        padded = True
    else:
        n_work = n

    # Pick the widest lane dimension (multiple of 128) that divides n_work.
    lane = 128
    cand = max_lane
    while cand >= 128:
        if cand % 128 == 0 and n_work % cand == 0:
            lane = cand
            break
        cand //= 2

    rows = n_work // lane
    x2d = x_flat.reshape(rows, lane)

    if rows <= tile_rows:
        # Tiny input: one full-array block, no pipelining overhead.
        block_rows = rows
        grid = (1,)
    else:
        block_rows = tile_rows  # multiple of 8; ragged last block is masked
        grid = (pl.cdiv(rows, tile_rows),)

    cost = pl.CostEstimate(
        flops=n_work,
        transcendentals=n_work,
        bytes_accessed=2 * n_work * itemsize,
    )

    extra = {}
    if donate_input:
        # Aliasing only helps when the input value is dead after this call
        # (e.g. inside a larger jitted model); otherwise XLA inserts a copy.
        extra["input_output_aliases"] = {0: 0}

    out2d = pl.pallas_call(
        _tanhshrink_kernel,
        out_shape=jax.ShapeDtypeStruct((rows, lane), dtype),
        grid_spec=pltpu.PrefetchScalarGridSpec(
            num_scalar_prefetch=0,
            grid=grid,
            in_specs=[pl.BlockSpec((block_rows, lane), lambda i: (i, 0))],
            out_specs=pl.BlockSpec((block_rows, lane), lambda i: (i, 0)),
        ),
        compiler_params=pltpu.CompilerParams(
            dimension_semantics=("parallel",),
            vmem_limit_bytes=32 * 1024 * 1024,
        ),
        cost_estimate=cost,
        **extra,
    )(x2d)

    if padded:
        return out2d.reshape(-1)[:n].reshape(orig_shape)
    return out2d.reshape(orig_shape)


# TODO(synk): backward pass (grad_output * tanh(x)**2) is not implemented; only
# the forward semantics of MyTanhshrink are provided here.


if __name__ == "__main__":
    key = jax.random.PRNGKey(0)
    k1, k2, k3 = jax.random.split(key, 3)

    # Primary case (matches the module's NCHW usage): 128-divisible, single block.
    x = jax.random.normal(k1, (2, 4, 16, 16), dtype=jnp.float32)
    y = tanhshrink(x)
    jax.block_until_ready(y)
    y_ref = x - jnp.tanh(x)
    assert y.shape == x.shape and y.dtype == x.dtype
    assert jnp.allclose(y, y_ref, atol=1e-6, rtol=1e-6)

    # Non-128-divisible case: exercises the pad + slice fallback path.
    x_odd = jax.random.normal(k2, (3, 5, 7), dtype=jnp.float32)
    y_odd = tanhshrink(x_odd)
    jax.block_until_ready(y_odd)
    assert y_odd.shape == x_odd.shape and y_odd.dtype == x_odd.dtype
    assert jnp.allclose(y_odd, x_odd - jnp.tanh(x_odd), atol=1e-6, rtol=1e-6)

    # Multi-tile case with a ragged last grid block (1536 rows, tile_rows=1024).
    x_big = jax.random.normal(k3, (2, 3, 256, 512), dtype=jnp.float32)
    y_big = tanhshrink(x_big)
    jax.block_until_ready(y_big)
    assert y_big.shape == x_big.shape and y_big.dtype == x_big.dtype
    assert jnp.allclose(y_big, x_big - jnp.tanh(x_big), atol=1e-6, rtol=1e-6)

    print("KERNEL_OK")
</pallas_src>

<mosaic_0001>
module attributes {stable_mosaic.version = 11 : i64} {
  func.func @_tanhshrink_kernel(%arg0: i32, %arg1: memref<4x512xf32, #tpu.memory_space<vmem>>, %arg2: memref<4x512xf32, #tpu.memory_space<vmem>>) attributes {dimension_semantics = [#tpu.dimension_semantics<parallel>], iteration_bounds = array<i64: 1>, scalar_prefetch = 0 : i64, scratch_operands = 0 : i64, tpu.core_type = #tpu.core_type<tc>, window_params = [{transform_indices = @transform_0, window_bounds = array<i64: 4, 512>}, {transform_indices = @transform_1, window_bounds = array<i64: 4, 512>}]} {
    %c0 = arith.constant 0 : index
    %c0_0 = arith.constant 0 : index
    %0 = vector.load %arg1[%c0, %c0_0] : memref<4x512xf32, #tpu.memory_space<vmem>>, vector<4x512xf32>
    %1 = math.tanh %0 : vector<4x512xf32>
    %2 = arith.subf %0, %1 : vector<4x512xf32>
    %c0_1 = arith.constant 0 : index
    %c0_2 = arith.constant 0 : index
    %3 = vector.load %arg2[%c0_1, %c0_2] : memref<4x512xf32, #tpu.memory_space<vmem>>, vector<4x512xf32>
    tpu.vector_store %arg2[%c0_1, %c0_2], %2 {strides = array<i32>} : memref<4x512xf32, #tpu.memory_space<vmem>>, vector<4x512xf32>,
    return
  }
  func.func @transform_0(%arg0: i32) -> (i32, i32) {
    %c0_i32 = arith.constant 0 : i32
    %c0_i32_0 = arith.constant 0 : i32
    return %arg0, %c0_i32 : i32, i32
  }
  func.func @transform_1(%arg0: i32) -> (i32, i32) {
    %c0_i32 = arith.constant 0 : i32
    %c0_i32_0 = arith.constant 0 : i32
    return %arg0, %c0_i32 : i32, i32
  }
}

</mosaic_0001>

<bundles_post_ra>
// kernel: tpu_custom_call.1
= control target key start
LH: loop header
LB: loop body
LE: loop exit
PB: predicated region body
PF: predicated region fallthrough
CT: control target
= control target key end

     0   :  { %6 = vsyncpa [#allocation3], 0  ;;  %s124_s0 = inlined_call_operand.hbm [shape: f32[4,512], index: 0, kind: input, shape index: {}]   ;;  %s125_s1 = inlined_call_operand.hbm [shape: f32[4,512], index: 1, kind: output, shape index: {}]  }
   0x1   :  { %7 = vsyncpa [#allocation4], 0  ;;  %s13_s8 = sshll.u32 %s124_s0, 4  ;;  %s106_s9 = smov [#allocation2]   ;;  %s14_s8 = int_to_ptr.hbm [resolvable:$true] %s13_s8 }
   0x2   :  { %s15_s10 = sshll.u32 %s106_s9, 4  ;;  %s16_s10 = int_to_ptr.vmem [resolvable:$true] %s15_s10 }
   0x3   :  { %18 = dma.hbm_to_vmem [thread:$0]  %s14_s8, 256, %s16_s10, [#allocation3]  }
   0x4   :  { %102 = dma.done.wait [#allocation3], 256  }
   0x5   :  { %103 = vsyncadd [#allocation3], 4294967040  ;;  %v23_v0 = vld [vmem:[#allocation2] sm:$0xff]  ;;  %v24_v1 = vld [vmem:[#allocation2 + $0x8] sm:$0xff]  ;;  %s107_s11 = smov [#allocation5]   ;;  %s38_s15 = sshll.u32 %s125_s1, 4  ;;  %s39_s15 = int_to_ptr.hbm [resolvable:$true] %s38_s15 }
   0x6   :  { %50 = vtanh.f32 %v23_v0  ;;  %s36_s12 = sshll.u32 %s107_s11, 4  ;;  %s37_s12 = int_to_ptr.vmem [resolvable:$true] %s36_s12 }
   0x7   :  { %52 = vtanh.f32 %v24_v1 }
   0xc   :  { %v51_v2 = vpop.eup %50 }
   0xd   :  { %v53_v3 = vpop.eup %52  ;;  %v27_v4 = vsub.f32 %v23_v0, %v51_v2 }
   0xe   :  { %v28_v5 = vsub.f32 %v24_v1, %v53_v3 }
   0xf   :  { %29 = vst [vmem:[#allocation5] sm:$0xff] %v27_v4 }
  0x10   :  { %30 = vst [vmem:[#allocation5 + $0x8] sm:$0xff] %v28_v5 }
  0x11   :  { %41 = dma.vmem_to_hbm [thread:$0]  %s37_s12, 256, %s39_s15, [#allocation4]  }
  0x12   :  { %104 = dma.done.wait [#allocation4], 256  }
  0x13   :  { %105 = vsyncadd [#allocation4], 4294967040 }
  0x14   :  { %46 = vsyncpa [#allocation3], 1 }
  0x15   :  { %47 = vsyncpa [#allocation4], 1 }

</bundles_post_ra>
